<compile_context>
chip_gen: v7x
topology: tpu7x:2x2x1
jax: 0.10.0
libtpu: 0.0.40
codegen_flags: <defaults>
</compile_context>

<pallas_src>
import jax
import jax.numpy as jnp
import numpy as np
from jax.experimental import pallas as pl
from jax.experimental.pallas import tpu as pltpu


# ----------------------------------------------------------------------------
# small helpers usable both inside Pallas kernels and in the pure-JAX reference
# ----------------------------------------------------------------------------
def _erf(x):
    # Abramowitz & Stegun 7.1.26 rational approximation, |err| < 1.5e-7.
    a1, a2, a3, a4, a5 = 0.254829592, -0.284496736, 1.421413741, -1.453152027, 1.061405429
    p = 0.3275911
    sign = jnp.where(x >= 0.0, 1.0, -1.0)
    ax = jnp.abs(x)
    t = 1.0 / (1.0 + p * ax)
    y = 1.0 - (((((a5 * t + a4) * t) + a3) * t + a2) * t + a1) * t * jnp.exp(-ax * ax)
    return sign * y


def _gelu_exact(x):
    # PyTorch nn.GELU() default: exact erf-based GELU.
    return 0.5 * x * (1.0 + _erf(x * (1.0 / np.sqrt(2.0))))


def _layernorm(x, gamma, beta, eps=1e-5):
    mu = jnp.mean(x, axis=-1, keepdims=True)
    var = jnp.mean((x - mu) ** 2, axis=-1, keepdims=True)
    return (x - mu) * jax.lax.rsqrt(var + eps) * gamma + beta


def _softmax_exact(s):
    s = s - jnp.max(s, axis=-1, keepdims=True)
    e = jnp.exp(s)
    return e / jnp.sum(e, axis=-1, keepdims=True)


def _encoder_vmem_limit():
    """Per-generation scoped VMEM limit (v5e/v6e: 128 MiB physical, v7x: 64 MiB/TC)."""
    try:
        info = pltpu.get_tpu_info()
        cap = getattr(info, "vmem_capacity_bytes", None)
        if cap:
            return int(min(cap * 0.80, 96 * 1024 * 1024))
    except Exception:
        pass
    return 48 * 1024 * 1024  # safe (< physical) on every generation


# ----------------------------------------------------------------------------
# Pallas kernels
# ----------------------------------------------------------------------------
def patch_embed_kernel(x_ref, w_ref, b_ref, cls_ref, pos_ref, o_ref):
    # x_ref  : (1, N, P) f32     w_ref  : (P, D) bf16
    # b_ref  : (1, D) f32        cls_ref: (1, D) f32
    # pos_ref: (S, D) f32        o_ref  : (1, S, D) f32
    x = x_ref[0].astype(jnp.bfloat16)                                 # (N, P)
    proj = jnp.dot(x, w_ref[...], preferred_element_type=jnp.float32) + b_ref[...]
    # Write the cls row and the projected patch rows separately (no sublane concat).
    o_ref[0, 0:1, :] = cls_ref[...] + pos_ref[0:1, :]
    o_ref[0, 1:, :] = proj + pos_ref[1:, :]


def make_encoder_stack_kernel(num_heads, head_dim, latent_dim):
    H, hd, D = num_heads, head_dim, latent_dim
    inv_scale = 1.0 / float(np.sqrt(hd))
    bf16, f32 = jnp.bfloat16, jnp.float32

    def kernel(x_ref,
               g1_ref, be1_ref, wqkv_ref, bqkv_ref,
               g2_ref, be2_ref, w1_ref, bm1_ref, w2_ref, bm2_ref,
               y_ref, att_ref,
               carry_ref, ctx_ref):
        # grid = (B, L): b = program_id(0), l = program_id(1) (layer axis, sequential).
        l = pl.program_id(1)

        # Residual stream lives in VMEM scratch across the layer axis of the grid.
        @pl.when(l == 0)
        def _():
            carry_ref[...] = x_ref[0]

        x = carry_ref[...]                                            # (S, D) f32

        # --- MSA branch: LN -> fused QKV GEMM -> per-head attention ----------
        z = _layernorm(x, g1_ref[0], be1_ref[0])
        zb = z.astype(bf16)
        qkv = jnp.dot(zb, wqkv_ref[0], preferred_element_type=f32) + bqkv_ref[0]
        # fold 1/sqrt(head_dim) into q: one (S, D) multiply instead of (H,S,S) divides
        q = qkv[:, 0:D] * inv_scale
        k = qkv[:, D:2 * D]
        v = qkv[:, 2 * D:3 * D]

        # Per-head attention with plain 2-D MXU matmuls and static lane slices:
        # avoids lane-splitting reshapes / 3-D transposes (relayouts) entirely.
        for h in range(H):
            lo, hi = h * hd, (h + 1) * hd
            qh = q[:, lo:hi].astype(bf16)                             # (S, hd)
            kh = k[:, lo:hi].astype(bf16)
            vh = v[:, lo:hi].astype(bf16)
            s = jax.lax.dot_general(qh, kh, (((1,), (1,)), ((), ())),
                                    preferred_element_type=f32)       # (S, S) = qh @ kh.T
            s = s - jnp.max(s, axis=-1, keepdims=True)
            e = jnp.exp(s)
            att_h = e * pl.reciprocal(jnp.sum(e, axis=-1, keepdims=True), approx=True)
            att_ref[0, 0, h] = att_h                                   # (S, S) writeback
            ctx_ref[:, lo:hi] = jnp.dot(att_h.astype(bf16), vh,
                                        preferred_element_type=f32)    # (S, hd)

        x1 = x + ctx_ref[...]                                          # dropout = identity

        # --- MLP branch: LN -> fc1 -> GELU -> fc2 -----------------------------
        z2 = _layernorm(x1, g2_ref[0], be2_ref[0])
        h1 = jnp.dot(z2.astype(bf16), w1_ref[0],
                     preferred_element_type=f32) + bm1_ref[0]
        h1 = _gelu_exact(h1)
        h2 = jnp.dot(h1.astype(bf16), w2_ref[0],
                     preferred_element_type=f32) + bm2_ref[0]

        new_x = x1 + h2
        carry_ref[...] = new_x

        # Only the last layer writes the activation output block for this batch element.
        @pl.when(l == pl.num_programs(1) - 1)
        def _():
            y_ref[0] = new_x

    return kernel


def head_kernel(x_ref, g_ref, b_ref, w_ref, bo_ref, o_ref):
    # x_ref : (B, D) cls tokens f32 ; w_ref : (D, C) bf16 ; o_ref : (B, C) f32
    z = _layernorm(x_ref[...], g_ref[...], b_ref[...])
    o_ref[...] = jnp.dot(z.astype(jnp.bfloat16), w_ref[...],
                         preferred_element_type=jnp.float32) + bo_ref[...]


# ----------------------------------------------------------------------------
# pallas_call wrappers
# ----------------------------------------------------------------------------
def patch_embedding(x, w, b, cls_tok, pos):
    B, N, P = x.shape
    D = w.shape[1]
    S = N + 1
    return pl.pallas_call(
        patch_embed_kernel,
        out_shape=jax.ShapeDtypeStruct((B, S, D), jnp.float32),
        grid=(B,),
        in_specs=[
            pl.BlockSpec((1, N, P), lambda i: (i, 0, 0)),
            pl.BlockSpec((P, D), lambda i: (0, 0)),
            pl.BlockSpec((1, D), lambda i: (0, 0)),
            pl.BlockSpec((1, D), lambda i: (0, 0)),
            pl.BlockSpec((S, D), lambda i: (0, 0)),     # pos is 2-D (S, D)
        ],
        out_specs=pl.BlockSpec((1, S, D), lambda i: (i, 0, 0)),
        compiler_params=pltpu.CompilerParams(dimension_semantics=("parallel",)),
    )(x, w, b, cls_tok, pos)


def encoder_stack(x, params, num_heads):
    """Run ALL encoder layers in one pallas_call.

    Weights are stacked along a leading L axis; grid=(B, L) with the layer axis
    innermost/'arbitrary', so BlockSpec pipelining prefetches layer l+1's weights
    while layer l computes.  The residual stream is carried in a VMEM scratch.
    NOTE(v7x): with 2 TensorCores the batch axis is 'parallel' — use B >= 2 per chip.
    """
    B, S, D = x.shape
    L = params["wqkv"].shape[0]
    Dm = params["w1"].shape[2]
    H = num_heads
    hd = D // H
    kernel = make_encoder_stack_kernel(H, hd, D)

    x_map = lambda b, l: (b, 0, 0)      # constant across l -> fetched once per b
    l_map = lambda b, l: (l, 0, 0)      # per-layer weights -> pipelined prefetch

    y, att = pl.pallas_call(
        kernel,
        out_shape=(
            jax.ShapeDtypeStruct((B, S, D), jnp.float32),
            jax.ShapeDtypeStruct((L, B, H, S, S), jnp.float32),
        ),
        grid=(B, L),
        in_specs=[
            pl.BlockSpec((1, S, D), x_map),                              # x
            pl.BlockSpec((1, 1, D), l_map), pl.BlockSpec((1, 1, D), l_map),        # ln1
            pl.BlockSpec((1, D, 3 * D), l_map), pl.BlockSpec((1, 1, 3 * D), l_map),  # fused qkv
            pl.BlockSpec((1, 1, D), l_map), pl.BlockSpec((1, 1, D), l_map),        # ln2
            pl.BlockSpec((1, D, Dm), l_map), pl.BlockSpec((1, 1, Dm), l_map),      # fc1
            pl.BlockSpec((1, Dm, D), l_map), pl.BlockSpec((1, 1, D), l_map),       # fc2
        ],
        out_specs=(
            pl.BlockSpec((1, S, D), x_map),
            pl.BlockSpec((1, 1, H, S, S), lambda b, l: (l, b, 0, 0, 0)),
        ),
        scratch_shapes=[
            pltpu.VMEM((S, D), jnp.float32),   # residual-stream carry across layers
            pltpu.VMEM((S, D), jnp.float32),   # per-head context assembly
        ],
        compiler_params=pltpu.CompilerParams(
            dimension_semantics=("parallel", "arbitrary"),
            vmem_limit_bytes=_encoder_vmem_limit(),
        ),
    )(x,
      params["ln1_g"], params["ln1_b"], params["wqkv"], params["bqkv"],
      params["ln2_g"], params["ln2_b"], params["w1"], params["b1"],
      params["w2"], params["b2"])
    return y, att


def mlp_head(x_cls, g, b, w, bo):
    B, D = x_cls.shape
    C = w.shape[1]
    full = lambda shape: pl.BlockSpec(shape, lambda i: (0,) * len(shape))
    return pl.pallas_call(
        head_kernel,
        out_shape=jax.ShapeDtypeStruct((B, C), jnp.float32),
        grid=(1,),
        in_specs=[full((B, D)), full((1, D)), full((1, D)), full((D, C)), full((1, C))],
        out_specs=full((B, C)),
    )(x_cls, g, b, w, bo)


def vision_transformer_forward(x, params, num_heads):
    x = patch_embedding(x, params["proj_w"], params["proj_b"],
                        params["cls"], params["pos"])
    x, att_all = encoder_stack(x, params, num_heads)       # att_all: (L, B, H, S, S)
    att_list = [att_all[l] for l in range(att_all.shape[0])]
    logits = mlp_head(x[:, 0], params["head_ln_g"], params["head_ln_b"],
                      params["head_w"], params["head_b"])
    return logits, att_list


# ----------------------------------------------------------------------------
# pure-JAX reference (same math & same bf16 matmul precision) for a sanity check
# ----------------------------------------------------------------------------
def reference_forward(x, params, num_heads):
    bf16, f32 = jnp.bfloat16, jnp.float32
    B, N, P = x.shape
    D = params["proj_w"].shape[1]
    L = params["wqkv"].shape[0]
    hd = D // num_heads
    inv_scale = 1.0 / float(np.sqrt(hd))

    proj = jnp.einsum("bnp,pd->bnd", x.astype(bf16), params["proj_w"],
                      preferred_element_type=f32) + params["proj_b"]
    cls = jnp.broadcast_to(params["cls"][None], (B, 1, D))
    z = jnp.concatenate([cls, proj], axis=1) + params["pos"][None]

    att_list = []
    for l in range(L):
        y = _layernorm(z, params["ln1_g"][l], params["ln1_b"][l]).astype(bf16)
        qkv = jnp.einsum("bsd,de->bse", y, params["wqkv"][l],
                         preferred_element_type=f32) + params["bqkv"][l]
        q = qkv[..., 0:D] * inv_scale
        k = qkv[..., D:2 * D]
        v = qkv[..., 2 * D:3 * D]
        q = q.reshape(B, -1, num_heads, hd).transpose(0, 2, 1, 3).astype(bf16)
        k = k.reshape(B, -1, num_heads, hd).transpose(0, 2, 1, 3).astype(bf16)
        v = v.reshape(B, -1, num_heads, hd).transpose(0, 2, 1, 3).astype(bf16)
        att = _softmax_exact(jnp.einsum("bhqd,bhkd->bhqk", q, k,
                                        preferred_element_type=f32))
        ctx = jnp.einsum("bhqk,bhkd->bhqd", att.astype(bf16), v,
                         preferred_element_type=f32)
        ctx = ctx.transpose(0, 2, 1, 3).reshape(B, -1, D)
        z = z + ctx
        y2 = _layernorm(z, params["ln2_g"][l], params["ln2_b"][l]).astype(bf16)
        h1 = _gelu_exact(jnp.einsum("bsd,dm->bsm", y2, params["w1"][l],
                                    preferred_element_type=f32) + params["b1"][l])
        h2 = jnp.einsum("bsm,md->bsd", h1.astype(bf16), params["w2"][l],
                        preferred_element_type=f32) + params["b2"][l]
        z = z + h2
        att_list.append(att)

    zc = _layernorm(z[:, 0], params["head_ln_g"], params["head_ln_b"]).astype(bf16)
    logits = jnp.dot(zc, params["head_w"], preferred_element_type=f32) + params["head_b"]
    return logits, att_list


# ----------------------------------------------------------------------------
# deterministic parameter construction (matmul weights stored in bf16, stacked over L)
# ----------------------------------------------------------------------------
def init_params(key, patch_vec_size, num_patches, latent_vec_dim,
                mlp_hidden_dim, num_layers, num_classes):
    bf16, f32 = jnp.bfloat16, jnp.float32
    D, Dm = latent_vec_dim, mlp_hidden_dim

    def lin(k, fan_in, fan_out):
        kw, kb = jax.random.split(k)
        w = (jax.random.normal(kw, (fan_in, fan_out), f32) / np.sqrt(fan_in)).astype(bf16)
        b = jax.random.normal(kb, (1, fan_out), f32) * 0.01
        return w, b

    keys = jax.random.split(key, 4 + num_layers)
    pw, pb = lin(keys[0], patch_vec_size, D)
    params = {
        "proj_w": pw, "proj_b": pb,
        "cls": jax.random.normal(keys[1], (1, D), f32),
        "pos": jax.random.normal(keys[2], (num_patches + 1, D), f32),
    }

    wqkv_l, bqkv_l, w1_l, b1_l, w2_l, b2_l = [], [], [], [], [], []
    for l in range(num_layers):
        lk = jax.random.split(keys[3 + l], 5)
        wq, bq = lin(lk[0], D, D)
        wk, bk = lin(lk[1], D, D)
        wv, bv = lin(lk[2], D, D)
        w1, b1 = lin(lk[3], D, Dm)
        w2, b2 = lin(lk[4], Dm, D)
        wqkv_l.append(jnp.concatenate([wq, wk, wv], axis=1))     # (D, 3D) bf16
        bqkv_l.append(jnp.concatenate([bq, bk, bv], axis=1))     # (1, 3D) f32
        w1_l.append(w1); b1_l.append(b1); w2_l.append(w2); b2_l.append(b2)

    params["ln1_g"] = jnp.ones((num_layers, 1, D), f32)
    params["ln1_b"] = jnp.zeros((num_layers, 1, D), f32)
    params["ln2_g"] = jnp.ones((num_layers, 1, D), f32)
    params["ln2_b"] = jnp.zeros((num_layers, 1, D), f32)
    params["wqkv"] = jnp.stack(wqkv_l)      # (L, D, 3D) bf16
    params["bqkv"] = jnp.stack(bqkv_l)      # (L, 1, 3D) f32
    params["w1"] = jnp.stack(w1_l)          # (L, D, Dm) bf16
    params["b1"] = jnp.stack(b1_l)          # (L, 1, Dm) f32
    params["w2"] = jnp.stack(w2_l)          # (L, Dm, D) bf16
    params["b2"] = jnp.stack(b2_l)          # (L, 1, D) f32

    hw, hb = lin(keys[3 + num_layers], D, num_classes)
    params["head_ln_g"] = jnp.ones((1, D), f32)
    params["head_ln_b"] = jnp.zeros((1, D), f32)
    params["head_w"] = hw
    params["head_b"] = hb
    return params


# ----------------------------------------------------------------------------
if __name__ == "__main__":
    # small shapes consistent with the module's forward
    B, num_patches, patch_vec_size = 2, 8, 16
    latent_vec_dim, num_heads, mlp_hidden_dim = 32, 4, 64
    num_layers, num_classes = 2, 10

    key = jax.random.PRNGKey(0)
    kx, kp = jax.random.split(key)
    x = jax.random.normal(kx, (B, num_patches, patch_vec_size), jnp.float32)
    params = init_params(kp, patch_vec_size, num_patches, latent_vec_dim,
                         mlp_hidden_dim, num_layers, num_classes)

    logits, att_list = vision_transformer_forward(x, params, num_heads)
    logits = jax.block_until_ready(logits)
    att_list = [jax.block_until_ready(a) for a in att_list]

    # sanity check against a pure-JAX reference using the same bf16 matmul precision
    ref_logits, ref_atts = reference_forward(x, params, num_heads)
    np.testing.assert_allclose(np.asarray(logits), np.asarray(ref_logits),
                               rtol=2e-2, atol=2e-2)
    for a, ra in zip(att_list, ref_atts):
        np.testing.assert_allclose(np.asarray(a), np.asarray(ra), rtol=2e-2, atol=2e-2)

    print("KERNEL_OK")
</pallas_src>

<mosaic_0001>
module attributes {stable_mosaic.version = 11 : i64} {
  func.func @patch_embed_kernel(%arg0: i32, %arg1: memref<1x8x16xf32, #tpu.memory_space<vmem>>, %arg2: memref<16x32xbf16, #tpu.memory_space<vmem>>, %arg3: memref<1x32xf32, #tpu.memory_space<vmem>>, %arg4: memref<1x32xf32, #tpu.memory_space<vmem>>, %arg5: memref<9x32xf32, #tpu.memory_space<vmem>>, %arg6: memref<1x9x32xf32, #tpu.memory_space<vmem>>) attributes {dimension_semantics = [#tpu.dimension_semantics<parallel>], iteration_bounds = array<i64: 2>, scalar_prefetch = 0 : i64, scratch_operands = 0 : i64, tpu.core_type = #tpu.core_type<tc>, window_params = [{transform_indices = @transform_0, window_bounds = array<i64: 1, 8, 16>}, {pipeline_mode = #tpu.pipeline_mode<synchronous>, transform_indices = @transform_1, window_bounds = array<i64: 16, 32>}, {pipeline_mode = #tpu.pipeline_mode<synchronous>, transform_indices = @transform_2, window_bounds = array<i64: 1, 32>}, {pipeline_mode = #tpu.pipeline_mode<synchronous>, transform_indices = @transform_3, window_bounds = array<i64: 1, 32>}, {pipeline_mode = #tpu.pipeline_mode<synchronous>, transform_indices = @transform_4, window_bounds = array<i64: 9, 32>}, {transform_indices = @transform_5, window_bounds = array<i64: 1, 9, 32>}]} {
    %c0 = arith.constant 0 : index
    %c0_0 = arith.constant 0 : index
    %c0_1 = arith.constant 0 : index
    %0 = vector.load %arg1[%c0, %c0_0, %c0_1] : memref<1x8x16xf32, #tpu.memory_space<vmem>>, vector<1x8x16xf32>
    %1 = vector.shape_cast %0 : vector<1x8x16xf32> to vector<8x16xf32>
    %2 = arith.truncf %1 : vector<8x16xf32> to vector<8x16xbf16>
    %c0_2 = arith.constant 0 : index
    %c0_3 = arith.constant 0 : index
    %3 = vector.load %arg2[%c0_2, %c0_3] : memref<16x32xbf16, #tpu.memory_space<vmem>>, vector<16x32xbf16>
    %cst = arith.constant dense<0.000000e+00> : vector<8x32xf32>
    %4 = tpu.matmul %2, %3, %cst {dimension_numbers = #tpu.dot_dimension_numbers<[1], [0], [0], [1], [0, 0, 1, 1], [], []>} : vector<8x16xbf16>, vector<16x32xbf16>, vector<8x32xf32> -> vector<8x32xf32>
    %c0_4 = arith.constant 0 : index
    %c0_5 = arith.constant 0 : index
    %5 = vector.load %arg3[%c0_4, %c0_5] : memref<1x32xf32, #tpu.memory_space<vmem>>, vector<1x32xf32>
    %6 = vector.broadcast %5 : vector<1x32xf32> to vector<8x32xf32>
    %7 = arith.addf %4, %6 : vector<8x32xf32>
    %c0_6 = arith.constant 0 : index
    %c0_7 = arith.constant 0 : index
    %8 = vector.load %arg4[%c0_6, %c0_7] : memref<1x32xf32, #tpu.memory_space<vmem>>, vector<1x32xf32>
    %c0_8 = arith.constant 0 : index
    %c0_9 = arith.constant 0 : index
    %9 = vector.load %arg5[%c0_8, %c0_9] : memref<9x32xf32, #tpu.memory_space<vmem>>, vector<1x32xf32>
    %10 = arith.addf %8, %9 : vector<1x32xf32>
    %c0_10 = arith.constant 0 : index
    %c0_11 = arith.constant 0 : index
    %c0_12 = arith.constant 0 : index
    %11 = vector.load %arg6[%c0_10, %c0_11, %c0_12] : memref<1x9x32xf32, #tpu.memory_space<vmem>>, vector<1x1x32xf32>
    %12 = vector.shape_cast %11 : vector<1x1x32xf32> to vector<1x32xf32>
    %13 = vector.shape_cast %10 : vector<1x32xf32> to vector<1x1x32xf32>
    tpu.vector_store %arg6[%c0_10, %c0_11, %c0_12], %13 {strides = array<i32>} : memref<1x9x32xf32, #tpu.memory_space<vmem>>, vector<1x1x32xf32>,
    %c1 = arith.constant 1 : index
    %c0_13 = arith.constant 0 : index
    %14 = vector.load %arg5[%c1, %c0_13] : memref<9x32xf32, #tpu.memory_space<vmem>>, vector<8x32xf32>
    %15 = arith.addf %7, %14 : vector<8x32xf32>
    %c0_14 = arith.constant 0 : index
    %c1_15 = arith.constant 1 : index
    %c0_16 = arith.constant 0 : index
    %16 = vector.load %arg6[%c0_14, %c1_15, %c0_16] : memref<1x9x32xf32, #tpu.memory_space<vmem>>, vector<1x8x32xf32>
    %17 = vector.shape_cast %16 : vector<1x8x32xf32> to vector<8x32xf32>
    %18 = vector.shape_cast %15 : vector<8x32xf32> to vector<1x8x32xf32>
    tpu.vector_store %arg6[%c0_14, %c1_15, %c0_16], %18 {strides = array<i32>} : memref<1x9x32xf32, #tpu.memory_space<vmem>>, vector<1x8x32xf32>,
    return
  }
  func.func @transform_0(%arg0: i32) -> (i32, i32, i32) {
    %c0_i32 = arith.constant 0 : i32
    %c0_i32_0 = arith.constant 0 : i32
    %c0_i32_1 = arith.constant 0 : i32
    return %arg0, %c0_i32, %c0_i32_0 : i32, i32, i32
  }
  func.func @transform_1(%arg0: i32) -> (i32, i32) {
    %c0_i32 = arith.constant 0 : i32
    %c0_i32_0 = arith.constant 0 : i32
    %c0_i32_1 = arith.constant 0 : i32
    return %c0_i32, %c0_i32_0 : i32, i32
  }
  func.func @transform_2(%arg0: i32) -> (i32, i32) {
    %c0_i32 = arith.constant 0 : i32
    %c0_i32_0 = arith.constant 0 : i32
    %c0_i32_1 = arith.constant 0 : i32
    return %c0_i32, %c0_i32_0 : i32, i32
  }
  func.func @transform_3(%arg0: i32) -> (i32, i32) {
    %c0_i32 = arith.constant 0 : i32
    %c0_i32_0 = arith.constant 0 : i32
    %c0_i32_1 = arith.constant 0 : i32
    return %c0_i32, %c0_i32_0 : i32, i32
  }
  func.func @transform_4(%arg0: i32) -> (i32, i32) {
    %c0_i32 = arith.constant 0 : i32
    %c0_i32_0 = arith.constant 0 : i32
    %c0_i32_1 = arith.constant 0 : i32
    return %c0_i32, %c0_i32_0 : i32, i32
  }
  func.func @transform_5(%arg0: i32) -> (i32, i32, i32) {
    %c0_i32 = arith.constant 0 : i32
    %c0_i32_0 = arith.constant 0 : i32
    %c0_i32_1 = arith.constant 0 : i32
    return %arg0, %c0_i32, %c0_i32_0 : i32, i32, i32
  }
}

</mosaic_0001>

<bundles_post_ra>
// kernel: tpu_custom_call.1
= control target key start
LH: loop header
LB: loop body
LE: loop exit
PB: predicated region body
PF: predicated region fallthrough
CT: control target
= control target key end

     0   :  { %10 = vsyncpa [#allocation3], 0  ;;  %s865_s0 = inlined_call_operand.hbm [shape: f32[2,8,16], index: 0, kind: input, shape index: {}]   ;;  %s866_s1 = inlined_call_operand.hbm [shape: bf16[16,32], index: 1, kind: input, shape index: {}]   ;;  %s867_s2 = inlined_call_operand.vmem [shape: f32[1,32], index: 2, kind: input, shape index: {}]   ;;  %s868_s3 = inlined_call_operand.vmem [shape: f32[1,32], index: 3, kind: input, shape index: {}]   ;;  %s869_s4 = inlined_call_operand.hbm [shape: f32[9,32], index: 4, kind: input, shape index: {}]   ;;  %s870_s5 = inlined_call_operand.vmem [shape: f32[2,9,32], index: 5, kind: output, shape index: {}]  }
   0x1   :  { %12 = vsyncpa [#allocation3 + $0x1], 0 }
   0x2   :  { %13 = vsyncpa [#allocation5], 0  ;;  %s687_s18 = smov 0   ;;  %s689_s19 = smov 0  }
   0x3   :  { %s691_s20 = smov 0   ;;  %s693_s21 = smov 0  }
   0x4 LB: > { %s706_s22 = sadd.s32 4294967295, %s646_s21   ;;  %p39_p0 = scmp.ne.s32.totalorder %s638_s19, %s634_s18  ;;  %s646_s21 = sphi %s693_s21, %s885_s21   ;;  %s642_s20 = sphi %s691_s20, %s884_s20   ;;  %s638_s19 = sphi %s689_s19, %s883_s19   ;;  %s634_s18 = sphi %s687_s18, %s882_s18  }
   0x5   : > { %p871_p1 = scmp.eq.s32.totalorder %s706_s22, 0  ;;  %p429_p2 = scmp.ge.s32.totalorder %s646_s21, 1 }
   0x6   : > { %p160_p3 = scmp.lt.s32.totalorder %s646_s21, 3  ;;  %s648_s25 = smov [#allocation4]  }
   0x7   : > { %p714_p4 = por %p871_p1, %p39_p0  ;;  %s172_s26 = sshll.u32 %s648_s25, 4  ;;  %s173_s26 = int_to_ptr.vmem [resolvable:$true] %s172_s26 }
   0x8   : > { %p718_p5 = pnand %p429_p2, %p160_p3  ;;  %s649_s28 = smov [#allocation6]  }
   0x9   : > { %s874_s23 = scalar_select %p714_p4, 1, 0 }
   0xa   : > { %s875_s24 = scalar_select %p718_p5, 1, 0 }
   0xb   : > { %p465_p6 = pneg %p718_p5  ;;  %s191_s29 = sshll.u32 %s649_s28, 4  ;;  %s730_s29 = int_to_ptr.vmem [resolvable:$true] %s191_s29 }
   0xc   : > { %s522_s7 = scalar_lea.hbm %s866_s1, 128 }
   0xd   : > { %p726_p7 = pnand %p465_p6, %p871_p1  ;;  %p523_p8 = scmp.ne.s32.totalorder %s866_s1, %s522_s7 }
   0xe   : > { %p529_p12 = scmp.lt.u32.totalorder %s522_s7, %s866_s1 }
   0xf   : > { %p524_p9 = pneg %p726_p7 }
  0x11   : > { %p525_p10 = pnand %p524_p9, %p523_p8 }
  0x13   : > { %p526_p11 = pneg %p525_p10 }
  0x15   : > { %p531_p13 = pnand %p529_p12, %p526_p11 }
  0x17   : > { %534 = shalt.err (!%p531_p13)
}
  0x18   : > { %s535_s12 = scalar_lea.vmem %s173_s26, 128  ;;  %p543_p6 = scmp.lt.s32.totalorder %s173_s26, %s173_s26 }
  0x19   : > { %p536_p0 = scmp.ne.s32.totalorder %s173_s26, %s535_s12  ;;  %p544_p1 = scmp.lt.s32.totalorder %s535_s12, %s535_s12 }
  0x1b   : > { %p538_p2 = pnand %p536_p0, %p524_p9  ;;  %p545_p4 = por %p544_p1, %p543_p6 }
  0x1d   : > { %p539_p3 = pneg %p538_p2 }
  0x1f   : > { %p546_p5 = pnand %p545_p4, %p539_p3 }
  0x21   : > { %549 = shalt.err (!%p546_p5)
}
  0x22   : > { %s650_s13 = smov 64   ;;  %s651_s14 = smov 4  }
  0x23   : > { %468 = dma.hbm_to_vmem [thread:$0]  (!%p726_p7), %s866_s1, 128, %s173_s26, [#allocation5], %s650_s13, %s650_s13, %s651_s14  }
  0x24   : > { %s550_s25 = scalar_lea.hbm %s869_s4, 256 }
  0x25   : > { %p551_p8 = scmp.ne.s32.totalorder %s869_s4, %s550_s25  ;;  %p557_p5 = scmp.lt.u32.totalorder %s550_s25, %s869_s4 }
  0x27   : > { %p553_p1 = pnand %p551_p8, %p524_p9 }
  0x29   : > { %p554_p4 = pneg %p553_p1 }
  0x2b   : > { %p559_p10 = pnand %p557_p5, %p554_p4 }
  0x2d   : > { %562 = shalt.err (!%p559_p10)
}
  0x2e   : > { %s563_s26 = scalar_lea.vmem %s730_s29, 256  ;;  %p571_p0 = scmp.lt.s32.totalorder %s730_s29, %s730_s29 }
  0x2f   : > { %p564_p11 = scmp.ne.s32.totalorder %s730_s29, %s563_s26  ;;  %p572_p2 = scmp.lt.s32.totalorder %s563_s26, %s563_s26 }
  0x31   : > { %p566_p12 = pnand %p564_p11, %p524_p9  ;;  %p573_p3 = por %p572_p2, %p571_p0 }
  0x33   : > { %p567_p13 = pneg %p566_p12 }
  0x35   : > { %p574_p6 = pnand %p573_p3, %p567_p13 }
  0x37   : > { %577 = shalt.err (!%p574_p6)
}
  0x38   : > { %s652_s8 = smov 128   ;;  %s653_s9 = smov 8  }
  0x39   : > { %471 = dma.hbm_to_vmem [thread:$0]  (!%p726_p7), %s869_s4, 256, %s730_s29, [#allocation5], %s652_s8, %s652_s8, %s653_s9  }
  0x3a   : > { %s780_s12 = sadd.s32 1, %s646_s21   ;;  %s26_s14 = sadd.s32 1, %s642_s20 }
  0x3b   : > { %s23_s13 = ssub.s32 %s646_s21, %s780_s12  ;;  %p33_p8 = scmp.ne.s32.totalorder %s642_s20, %s638_s19 }
  0x3c   : > { %p24_p9 = scmp.eq.s32.totalorder %s23_s13, 0  ;;  %p34_p1 = scmp.eq.s32.totalorder %s646_s21, 0 }
  0x3d   : > { %p478_p5 = scmp.lt.s32.totalorder %s646_s21, 2  ;;  %s205_s16 = sand.u32 1, %s642_s20  }
  0x3e   : > { %s789_s15 = scalar_select %p24_p9, %s642_s20, %s26_s14  }
  0x3f   : > { %p35_p4 = por %p34_p1, %p33_p8  ;;  %s434_s17 = sshll.u32 %s646_s21, 7 }
  0x40   : > { %s433_s18 = sshll.u32 %s205_s16, 3  ;;  %s797_s28 = scalar_lea.hbm %s865_s0, %s434_s17 }
  0x41   : > { %s209_s29 = scalar_lea.vmem [#allocation2], %s433_s18  ;;  %p799_p7 = pnand %p478_p5, %p35_p4 }
  0x42   : > { %s216_s30 = sshll.u32 %s209_s29, 4  ;;  %s206_s21 = scalar_lea.sflag [#allocation3], %s205_s16  ;;  %s803_s30 = int_to_ptr.vmem [resolvable:$true] %s216_s30 }
  0x43   : > { %s578_s7 = scalar_lea.hbm %s797_s28, 128  ;;  %p580_p11 = pneg %p799_p7 }
  0x44   : > { %p579_p10 = scmp.ne.s32.totalorder %s797_s28, %s578_s7  ;;  %s583_s9 = scalar_lea.hbm %s865_s0, 256 }
  0x45   : > { %p584_p0 = scmp.lt.u32.totalorder %s797_s28, %s865_s0  ;;  %p585_p2 = scmp.lt.u32.totalorder %s583_s9, %s578_s7 }
  0x46   : > { %p581_p12 = pnand %p580_p11, %p579_p10  ;;  %p587_p6 = scmp.lt.u32.totalorder %s578_s7, %s797_s28 }
  0x47   : > { %p586_p3 = por %p585_p2, %p584_p0 }
  0x48   : > { %p582_p13 = pneg %p581_p12 }
  0x49   : > { %p588_p9 = por %p587_p6, %p586_p3 }
  0x4b   : > { %p589_p8 = pnand %p588_p9, %p582_p13 }
  0x4d   : > { %592 = shalt.err (!%p589_p8)
}
  0x4e   : > { %s593_s13 = scalar_lea.vmem %s803_s30, 128  ;;  %s654_s14 = smov [#allocation2]  }
  0x4f   : > { %p594_p1 = scmp.ne.s32.totalorder %s803_s30, %s593_s13  ;;  %s598_s16 = sshll.u32 %s654_s14, 4  ;;  %s599_s16 = int_to_ptr.vmem [resolvable:$false] %s598_s16 }
  0x50   : > { %s600_s17 = scalar_lea.vmem %s599_s16, 256  ;;  %p601_p10 = scmp.lt.s32.totalorder %s803_s30, %s599_s16 }
  0x51   : > { %p596_p4 = pnand %p594_p1, %p580_p11  ;;  %p602_p12 = scmp.lt.s32.totalorder %s600_s17, %s593_s13 }
  0x53   : > { %p597_p5 = pneg %p596_p4  ;;  %p603_p0 = por %p602_p12, %p601_p10 }
  0x55   : > { %p604_p2 = pnand %p603_p0, %p597_p5 }
  0x57   : > { %607 = shalt.err (!%p604_p2)
}
  0x58   : > { %475 = dma.hbm_to_vmem [thread:$0]  (!%p799_p7), %s797_s28, 128, %s803_s30, %s206_s21  }
  0x59   : > { %p878_p13 = scmp.ne.s32.totalorder %s875_s24, 0 }
  0x5a   : > { %s227_s18 = sand.u32 (!%p878_p13), 1, %s638_s19   ;;  %p879_p11 = scmp.ne.s32.totalorder (!%p878_p13), %s874_s23, 0 }
  0x5b   : > { %225 = sbr.rel (%p878_p13) target bundleno = 324 (0x144), region = 40  ;;  %s436_s27 = sshll.u32 (!%p878_p13), %s227_s18, 3 }
  0x5c   : > { %s228_s25 = scalar_lea.sflag (!%p878_p13), [#allocation3], %s227_s18  ;;  %s231_s29 = scalar_lea.vmem (!%p878_p13), [#allocation2], %s436_s27 }
  0x62   : > { %625 = dma.done.wait (%p879_p11), %s228_s25, 128  }
  0x63   : > { %627 = vsyncadd (%p879_p11), %s228_s25, 4294967168  ;;  %p880_p3 = scmp.eq.s32.totalorder %s706_s22, 0 }
  0x65   : > { %629 = dma.done.wait (%p880_p3), [#allocation5], 384   ;;  %p881_p6 = pmov %p880_p3 }
  0x66   : > { %v655_v0 = vmov 0.0   ;;  %vm656_vm0 = vmmov 0   ;;  %v521_v1 = vld [vmem:[#allocation4] sm:$0xff]   ;;  %v272_v2 = vld [vmem:[%s231_s29] sm:$0xff]  ;;  %vm289_vm1 = vcmask 130048   ;;  %p266_p7 = scmp.lt.s32.totalorder %s706_s22, 1 }
  0x67   : > { %631 = vsyncadd (%p881_p6), [#allocation5], 4294966912  ;;  %449 = vmatprep.subr.bf16.mxu0 %v655_v0  ;;  %451 = vmatprep.mubr.msk.bf16.mxu0 %vm656_vm0, %v655_v0  ;;  %v273_v3 = vpack.c.bf16 %v272_v2, %v272_v2  ;;  %v333_v4 = vld [vmem:[%s868_s3] sm:$0x1]  ;;  %v334_v5 = vld [vmem:[#allocation6] sm:$0x1] }
  0x68   : > { %450 = vmatpush3.bf16.msra.mxu0 %v521_v1  ;;  %s887_s22 = smov (!%p266_p7, %s706_s22), 1  ;;  %vm336_vm2 = vcmask 253952   ;;  %v335_v6 = vadd.f32 %v334_v5, %v333_v4  ;;  %v441_v7 = vld [vmem:[%s867_s2] ss:$0 sm:$0xff]  ;;  %vm340_vm3 = vcmask 261120  }
  0x69   : > { %s446_s23 = sshll.u32 %s887_s22, 4  ;;  %v338_v9 = vld [vmem:[#allocation6 + $0x1] sm:$0xff] }
  0x6a   : > { %s270_s30 = scalar_lea.vmem %s870_s5, %s446_s23 }
  0x6b   : > { %452 = vmatmul.mubr.msk.bf16.vlgmr.msra.gmra.mrb[0].mxu0 %vm289_vm1, %v273_v3  ;;  %337 = vst.msk [vmem:[%s270_s30] sm:$0x1] %vm336_vm2, %v335_v6 }
 0x13e   : > { %v327_v8 = vpop.f32.mrb[0].mxu0 }
 0x13f   : > { %v328_v10 = vadd.f32 %v441_v7, %v327_v8  ;;  %v453_v11 = vpop.f32.mrb[1].mxu0 }
 0x140   : > { %v330_v12 = vpop.f32.mrb[2].mxu0 }
 0x141   : > { %v339_v13 = vadd.f32 %v338_v9, %v328_v10  ;;  %v454_v14 = vpop.f32.mrb[3].mxu0 }
 0x143   : > { %341 = vst.msk [vmem:[%s270_s30 + $0x1] sm:$0xff] %vm340_vm3, %v339_v13 }
 0x144 PF: > { %p16_p9 = scmp.ge.s32.totalorder %s780_s12, 4   ;;  %s882_s18 = smov %s638_s19 }
 0x145   : > { %s883_s19 = smov %s642_s20  ;;  %s884_s20 = smov %s789_s15 }
 0x146   : > { %s885_s21 = smov %s780_s12  ;;  %18 = sbr.rel (!%p16_p9) target bundleno = 4 (0x4), region = 88 }
 0x14d   :  { %363 = vsyncpa [#allocation3], 1 }
 0x14e   :  { %365 = vsyncpa [#allocation3 + $0x1], 1 }
 0x14f   :  { %366 = vsyncpa [#allocation5], 1 }

</bundles_post_ra>
